<compile_context>
chip_gen: v7x
topology: tpu7x:2x2x1
jax: 0.10.0
libtpu: 0.0.40
codegen_flags: <defaults>
</compile_context>

<pallas_src>
import math

import jax
import jax.numpy as jnp
from jax.experimental import pallas as pl
from jax.experimental.pallas import tpu as pltpu


MAX_POSITION = 5000  # same as the PyTorch module's __init__

# Below this many bytes of x, a fused XLA `x + pe` beats any pallas_call.
_SMALL_INPUT_BYTES = 2 * 1024 * 1024


def _budgets():
    """Return (per-block byte budget, vmem_limit_bytes), generation-gated.

    v5e/v6e: 128 MiB physical VMEM -> 8 MiB blocks, 96 MiB scoped limit.
    v7x:      64 MiB per TC        -> 4 MiB blocks, 48 MiB scoped limit.
    Unknown / query failure        -> conservative (v7x numbers).
    """
    vmem = None
    try:
        info = pltpu.get_tpu_info()
        vmem = getattr(info, "vmem_capacity_bytes", None)
    except Exception:
        vmem = None
    if vmem is not None and vmem >= 96 * 1024 * 1024:
        return 8 * 1024 * 1024, 96 * 1024 * 1024
    return 4 * 1024 * 1024, 48 * 1024 * 1024


def _sublane_multiple(dtype) -> int:
    # Native packed sublane tiling: f32 (8,128), bf16 (16,128), int8/fp8 (32,128).
    return {4: 8, 2: 16, 1: 32}.get(jnp.dtype(dtype).itemsize, 8)


def make_positional_encoding(position: int, d_model: int) -> jnp.ndarray:
    """Replicates PositionalEncoding.positional_encoding: float32 (position, d_model)."""
    pos = jnp.arange(position, dtype=jnp.float32)[:, None]          # (P, 1)
    i = jnp.arange(d_model, dtype=jnp.float32)[None, :]             # (1, D)
    angle_rates = 1.0 / jnp.power(
        10000.0, (2.0 * jnp.floor(i / 2.0)) / jnp.float32(d_model)
    )
    angle_rads = pos * angle_rates                                   # (P, D)
    sines = jnp.sin(angle_rads[:, 0::2])
    cosines = jnp.cos(angle_rads[:, 1::2])
    pe = jnp.zeros((position, d_model), dtype=jnp.float32)
    pe = pe.at[:, 0::2].set(sines)
    pe = pe.at[:, 1::2].set(cosines)
    return pe


def _add_pe_kernel(x_ref, pe_ref, o_ref):
    # pe_ref has leading dim 1 and broadcasts against x_ref's leading (batch)
    # dim; the broadcast is free on the VPU.  Shapes otherwise congruent.
    o_ref[...] = (x_ref[...] + pe_ref[...]).astype(o_ref.dtype)


def _forward_seq_tiled(x, pe3, donate_input, block_bytes, vmem_limit):
    """x: (B, S, D) with D % 128 == 0; pe3: (1, S, D) already in x.dtype."""
    b, s, d = x.shape
    itemsize = jnp.dtype(x.dtype).itemsize
    sub = _sublane_multiple(x.dtype)
    max_elems = max(block_bytes // itemsize, d)

    # Sequence tile first (multiple of the packed sublane tiling, or full S),
    # then fold as much of the batch into the block as the budget still allows.
    ts = min(s, max(sub, (max_elems // d) // sub * sub))
    bb = min(b, max(1, max_elems // (ts * d)))

    n_seq = pl.cdiv(s, ts)
    n_bat = pl.cdiv(b, bb)

    # Batch innermost + constant PE block index -> PE tile never re-DMA'd.
    # Keep only the seq axis "parallel" when it has >1 block so v7x megacore
    # shards it (preserving per-core PE residency); if seq is a single block,
    # let the batch axis carry the core parallelism instead.
    batch_sem = "arbitrary" if n_seq > 1 else "parallel"

    return pl.pallas_call(
        _add_pe_kernel,
        out_shape=jax.ShapeDtypeStruct((b, s, d), x.dtype),
        grid=(n_seq, n_bat),
        in_specs=[
            pl.BlockSpec((bb, ts, d), lambda si, bi: (bi, si, 0)),
            pl.BlockSpec((1, ts, d), lambda si, bi: (0, si, 0)),
        ],
        out_specs=pl.BlockSpec((bb, ts, d), lambda si, bi: (bi, si, 0)),
        # Only alias when the caller truly donates x (never reads it again).
        input_output_aliases={0: 0} if donate_input else {},
        compiler_params=pltpu.CompilerParams(
            dimension_semantics=("parallel", batch_sem),
            vmem_limit_bytes=vmem_limit,
        ),
    )(x, pe3)


def _forward_flat(x, pe_sd, donate_input, block_bytes, vmem_limit):
    """Fallback for narrow D when seq-grouping doesn't apply.

    Flattens to (B, S*D) and tiles the flattened last dim in multiples of 128
    so stores are lane-dense / unmasked.  For large B, the batch axis is tiled
    (multiples of 8) instead of shrinking the lane tile, keeping per-row
    contiguous DMA chunks large.  pe_sd is (S, D) already in x.dtype.
    """
    b, s, d = x.shape
    flat = s * d
    itemsize = jnp.dtype(x.dtype).itemsize
    max_elems = max(block_bytes // itemsize, 128)

    x2 = x.reshape(b, flat)
    pe2 = pe_sd.reshape(1, flat)

    if flat <= 128:
        tl = flat  # block dim equals full dim: allowed even if < 128
    else:
        tl = min(flat, 4096, max_elems)
        tl = max(128, tl // 128 * 128)
    bb = min(b, max(1, max_elems // tl))
    if bb < b:
        # Sublane dim of a 2-D block must be a multiple of 8 (or the full B).
        bb = min(b, max(8, bb // 8 * 8))

    n_lane = pl.cdiv(flat, tl)
    n_bat = pl.cdiv(b, bb)
    batch_sem = "arbitrary" if n_lane > 1 else "parallel"

    out2 = pl.pallas_call(
        _add_pe_kernel,
        out_shape=jax.ShapeDtypeStruct((b, flat), x.dtype),
        grid=(n_lane, n_bat),
        in_specs=[
            pl.BlockSpec((bb, tl), lambda li, bi: (bi, li)),
            pl.BlockSpec((1, tl), lambda li, bi: (0, li)),
        ],
        out_specs=pl.BlockSpec((bb, tl), lambda li, bi: (bi, li)),
        input_output_aliases={0: 0} if donate_input else {},
        compiler_params=pltpu.CompilerParams(
            dimension_semantics=("parallel", batch_sem),
            vmem_limit_bytes=vmem_limit,
        ),
    )(x2, pe2)
    return out2.reshape(b, s, d)


def positional_encoding_forward(x: jnp.ndarray, pe_full: jnp.ndarray,
                                donate_input: bool = False,
                                force_kernel: bool = False) -> jnp.ndarray:
    """x: (B, S, D); pe_full: (MAX_POSITION, D) float32 table. Returns x + PE[:S]."""
    b, s, d = x.shape
    assert s <= pe_full.shape[0], (
        f"sequence length {s} exceeds positional table size {pe_full.shape[0]}"
    )
    assert d == pe_full.shape[1], "d_model mismatch between x and PE table"

    itemsize = jnp.dtype(x.dtype).itemsize
    # Tiny inputs: pallas_call launch + pipeline prime/drain dominates; a fused
    # XLA add is strictly faster there.
    if not force_kernel and b * s * d * itemsize < _SMALL_INPUT_BYTES:
        return x + pe_full[None, :s, :].astype(x.dtype)

    block_bytes, vmem_limit = _budgets()

    # Pre-cast PE once to x.dtype (one-off S*D op, negligible vs main traffic).
    # TODO(synk): PyTorch keeps the PE buffer in f32; for bf16 x this bf16 PE
    # add can differ in the last bit vs an f32-accumulated add.
    pe_sd = pe_full[:s].astype(x.dtype)

    if d % 128 == 0:
        return _forward_seq_tiled(x, pe_sd[None], donate_input,
                                  block_bytes, vmem_limit)

    # Narrow D: group g consecutive seq rows so the last dim becomes a
    # lane-dense multiple of 128 and the sublane dim carries seq (full vregs,
    # unmasked stores); reuse the seq-tiled path on the grouped view.
    g = 128 // math.gcd(d, 128)
    if s % g == 0 and s >= g:
        d_eff = g * d
        x3 = x.reshape(b, s // g, d_eff)
        pe3 = pe_sd.reshape(1, s // g, d_eff)
        out = _forward_seq_tiled(x3, pe3, donate_input, block_bytes, vmem_limit)
        return out.reshape(b, s, d)

    # Ragged seq vs the grouping factor: flattened lane-dense fallback.
    return _forward_flat(x, pe_sd, donate_input, block_bytes, vmem_limit)


if __name__ == "__main__":
    key = jax.random.PRNGKey(0)
    k1, k2, k3 = jax.random.split(key, 3)

    # Case 1: narrow D (32), S divisible by grouping factor g=4
    #         -> grouped lane-dense path, block (B, S//g, 128).
    B, S, D = 2, 8, 32
    x1 = jax.random.normal(k1, (B, S, D), dtype=jnp.float32)
    pe1 = make_positional_encoding(MAX_POSITION, D)
    out1 = jax.block_until_ready(
        positional_encoding_forward(x1, pe1, force_kernel=True))
    ref1 = x1 + pe1[None, :S, :]
    assert out1.shape == (B, S, D)
    assert jnp.allclose(out1, ref1, atol=1e-6), "mismatch (grouped narrow-D path)"

    # Case 2: lane-aligned D (128) -> 3-D seq-tiled path, batch folded in block.
    B2, S2, D2 = 2, 16, 128
    x2 = jax.random.normal(k2, (B2, S2, D2), dtype=jnp.float32)
    pe2 = make_positional_encoding(MAX_POSITION, D2)
    out2 = jax.block_until_ready(
        positional_encoding_forward(x2, pe2, force_kernel=True))
    ref2 = x2 + pe2[None, :S2, :]
    assert out2.shape == (B2, S2, D2)
    assert jnp.allclose(out2, ref2, atol=1e-6), "mismatch (seq-tiled path)"

    # Case 3: narrow D (48) with ragged seq (7 % g=8 != 0)
    #         -> flattened lane-dense fallback with a partial last lane block.
    B3, S3, D3 = 2, 7, 48
    x3 = jax.random.normal(k3, (B3, S3, D3), dtype=jnp.float32)
    pe3 = make_positional_encoding(MAX_POSITION, D3)
    out3 = jax.block_until_ready(
        positional_encoding_forward(x3, pe3, force_kernel=True))
    ref3 = x3 + pe3[None, :S3, :]
    assert out3.shape == (B3, S3, D3)
    assert jnp.allclose(out3, ref3, atol=1e-6), "mismatch (flattened path)"

    # Case 4: tiny-shape XLA fast path (no pallas_call).
    out4 = jax.block_until_ready(positional_encoding_forward(x1, pe1))
    assert jnp.allclose(out4, ref1, atol=1e-6), "mismatch (XLA fast path)"

    print("KERNEL_OK")
</pallas_src>

<mosaic_0001>
module attributes {stable_mosaic.version = 11 : i64} {
  func.func @_add_pe_kernel(%arg0: i32, %arg1: i32, %arg2: memref<2x2x128xf32, #tpu.memory_space<vmem>>, %arg3: memref<1x2x128xf32, #tpu.memory_space<vmem>>, %arg4: memref<2x2x128xf32, #tpu.memory_space<vmem>>) attributes {dimension_semantics = [#tpu.dimension_semantics<parallel>, #tpu.dimension_semantics<parallel>], iteration_bounds = array<i64: 1, 1>, scalar_prefetch = 0 : i64, scratch_operands = 0 : i64, tpu.core_type = #tpu.core_type<tc>, window_params = [{transform_indices = @transform_0, window_bounds = array<i64: 2, 2, 128>}, {transform_indices = @transform_1, window_bounds = array<i64: 1, 2, 128>}, {transform_indices = @transform_2, window_bounds = array<i64: 2, 2, 128>}]} {
    %c0 = arith.constant 0 : index
    %c0_0 = arith.constant 0 : index
    %c0_1 = arith.constant 0 : index
    %0 = vector.load %arg2[%c0, %c0_0, %c0_1] : memref<2x2x128xf32, #tpu.memory_space<vmem>>, vector<2x2x128xf32>
    %c0_2 = arith.constant 0 : index
    %c0_3 = arith.constant 0 : index
    %c0_4 = arith.constant 0 : index
    %1 = vector.load %arg3[%c0_2, %c0_3, %c0_4] : memref<1x2x128xf32, #tpu.memory_space<vmem>>, vector<1x2x128xf32>
    %2 = vector.broadcast %1 : vector<1x2x128xf32> to vector<2x2x128xf32>
    %3 = arith.addf %0, %2 : vector<2x2x128xf32>
    %c0_5 = arith.constant 0 : index
    %c0_6 = arith.constant 0 : index
    %c0_7 = arith.constant 0 : index
    %4 = vector.load %arg4[%c0_5, %c0_6, %c0_7] : memref<2x2x128xf32, #tpu.memory_space<vmem>>, vector<2x2x128xf32>
    tpu.vector_store %arg4[%c0_5, %c0_6, %c0_7], %3 {strides = array<i32>} : memref<2x2x128xf32, #tpu.memory_space<vmem>>, vector<2x2x128xf32>,
    return
  }
  func.func @transform_0(%arg0: i32, %arg1: i32) -> (i32, i32, i32) {
    %c0_i32 = arith.constant 0 : i32
    %c0_i32_0 = arith.constant 0 : i32
    return %arg1, %arg0, %c0_i32 : i32, i32, i32
  }
  func.func @transform_1(%arg0: i32, %arg1: i32) -> (i32, i32, i32) {
    %c0_i32 = arith.constant 0 : i32
    %c0_i32_0 = arith.constant 0 : i32
    %c0_i32_1 = arith.constant 0 : i32
    return %c0_i32, %arg0, %c0_i32_0 : i32, i32, i32
  }
  func.func @transform_2(%arg0: i32, %arg1: i32) -> (i32, i32, i32) {
    %c0_i32 = arith.constant 0 : i32
    %c0_i32_0 = arith.constant 0 : i32
    return %arg1, %arg0, %c0_i32 : i32, i32, i32
  }
}

</mosaic_0001>

<bundles_post_ra>
// kernel: tpu_custom_call.1
= control target key start
LH: loop header
LB: loop body
LE: loop exit
PB: predicated region body
PF: predicated region fallthrough
CT: control target
= control target key end

     0   :  { %7 = vsyncpa [#allocation3], 0  ;;  %s154_s0 = inlined_call_operand.hbm [shape: f32[2,2,128], index: 0, kind: input, shape index: {}]   ;;  %s155_s1 = inlined_call_operand.vmem [shape: f32[1,2,128], index: 1, kind: input, shape index: {}]   ;;  %s156_s2 = inlined_call_operand.hbm [shape: f32[2,2,128], index: 2, kind: output, shape index: {}]  }
   0x1   :  { %8 = vsyncpa [#allocation4], 0  ;;  %s102_s9 = smov [#allocation2]   ;;  %s54_s13 = scalar_lea.hbm %s154_s0, 64 }
   0x2   :  { %s14_s10 = sshll.u32 %s102_s9, 4  ;;  %p55_p0 = scmp.ne.s32.totalorder %s154_s0, %s54_s13  ;;  %s15_s10 = int_to_ptr.vmem [resolvable:$true] %s14_s10 }
   0x3   :  { %p58_p1 = scmp.lt.u32.totalorder %s54_s13, %s154_s0 }
   0x5   :  { %p60_p2 = pnand %p58_p1, %p55_p0 }
   0x7   :  { %63 = shalt.err (!%p60_p2)
}
   0x8   :  { %s64_s18 = scalar_lea.vmem %s15_s10, 64  ;;  %p69_p4 = scmp.lt.s32.totalorder %s15_s10, %s15_s10 }
   0x9   :  { %p65_p3 = scmp.ne.s32.totalorder %s15_s10, %s64_s18  ;;  %p70_p5 = scmp.lt.s32.totalorder %s64_s18, %s64_s18 }
   0xb   :  { %p71_p6 = por %p70_p5, %p69_p4 }
   0xd   :  { %p72_p7 = pnand %p71_p6, %p65_p3 }
   0xf   :  { %75 = shalt.err (!%p72_p7)
}
  0x10   :  { %s103_s19 = smov 32   ;;  %s104_s20 = smov 2  }
  0x11   :  { %20 = dma.hbm_to_vmem [thread:$0]  %s154_s0, 64, %s15_s10, [#allocation3], %s103_s19, %s103_s19, %s104_s20  }
  0x12   :  { %98 = dma.done.wait [#allocation3], 64  }
  0x13   :  { %99 = vsyncadd [#allocation3], 4294967232  ;;  %s105_s23 = smov [#allocation5]   ;;  %v26_v0 = vld [vmem:[#allocation2] sm:$0x3] }
  0x14   :  { %s38_s24 = sshll.u32 %s105_s23, 4  ;;  %v28_v1 = vld [vmem:[%s155_s1] sm:$0x3]  ;;  %v27_v2 = vld [vmem:[#allocation2 + $0x2] sm:$0x3]  ;;  %s39_s24 = int_to_ptr.vmem [resolvable:$true] %s38_s24 }
  0x15   :  { %v29_v3 = vadd.f32 %v28_v1, %v26_v0  ;;  %v30_v4 = vadd.f32 %v28_v1, %v27_v2  ;;  %s76_s27 = scalar_lea.vmem %s39_s24, 64  ;;  %p81_p9 = scmp.lt.s32.totalorder %s39_s24, %s39_s24 }
  0x16   :  { %p77_p8 = scmp.ne.s32.totalorder %s39_s24, %s76_s27  ;;  %p82_p10 = scmp.lt.s32.totalorder %s76_s27, %s76_s27 }
  0x17   :  { %31 = vst [vmem:[#allocation5] sm:$0x3] %v29_v3  ;;  %32 = vst [vmem:[#allocation5 + $0x2] sm:$0x3] %v30_v4 }
  0x18   :  { %p83_p11 = por %p82_p10, %p81_p9 }
  0x1a   :  { %p84_p12 = pnand %p83_p11, %p77_p8 }
  0x1c   :  { %87 = shalt.err (!%p84_p12)
}
  0x1d   :  { %s88_s29 = scalar_lea.hbm %s156_s2, 64 }
  0x1e   :  { %p89_p13 = scmp.ne.s32.totalorder %s156_s2, %s88_s29  ;;  %p92_p0 = scmp.lt.u32.totalorder %s88_s29, %s156_s2 }
  0x20   :  { %p94_p1 = pnand %p92_p0, %p89_p13 }
  0x22   :  { %97 = shalt.err (!%p94_p1)
}
  0x23   :  { %44 = dma.vmem_to_hbm [thread:$0]  %s39_s24, 64, %s156_s2, [#allocation4], %s103_s19, %s103_s19, %s104_s20  }
  0x24   :  { %100 = dma.done.wait [#allocation4], 64  }
  0x25   :  { %101 = vsyncadd [#allocation4], 4294967232 }
  0x26   :  { %48 = vsyncpa [#allocation3], 1 }
  0x27   :  { %49 = vsyncpa [#allocation4], 1 }

</bundles_post_ra>
